<compile_context>
chip_gen: v6e
topology: v6e:2x2x1
jax: 0.10.0
libtpu: 0.0.40
codegen_flags: <defaults>
</compile_context>

<pallas_src>
import functools

import jax
import jax.numpy as jnp
from jax.experimental import pallas as pl
from jax.experimental.pallas import tpu as pltpu

EPS = 1e-5
DROP_RATE = 0.5
LANE = 128
SUBLANE = 8


def _round_up(x, m):
    return ((x + m - 1) // m) * m


# ---------------------------------------------------------------------------
# Pass 1a: Y_lin = X @ W^T + b  (row-tiled), accumulating column sum / sumsq.
# ---------------------------------------------------------------------------
def _linear_stats_kernel(n_rows, tile_m, x_ref, wt_ref, b_ref,
                         ylin_ref, csum_ref, csq_ref):
    i = pl.program_id(0)          # top level only -> interpret-safe

    @pl.when(i == 0)
    def _init():
        csum_ref[...] = jnp.zeros_like(csum_ref)
        csq_ref[...] = jnp.zeros_like(csq_ref)

    # bf16 MXU inputs (single-pass vmatmul), f32 accumulation.
    x = x_ref[...].astype(jnp.bfloat16)
    y = jnp.dot(x, wt_ref[...], preferred_element_type=jnp.float32)
    y = y + b_ref[...]
    ylin_ref[...] = y

    # Keep garbage rows of a ragged last row block out of the batch stats.
    if n_rows % tile_m != 0:
        row = i * tile_m + jax.lax.broadcasted_iota(jnp.int32, y.shape, 0)
        y = jnp.where(row < n_rows, y, 0.0)
    csum_ref[...] += jnp.sum(y, axis=0, keepdims=True)
    csq_ref[...] += jnp.sum(y * y, axis=0, keepdims=True)


# ---------------------------------------------------------------------------
# Pass 1b: Y = scale * Y_lin + shift  (bf16), padded rows forced to exact 0.
# ---------------------------------------------------------------------------
def _bn_apply_kernel(n_rows, tile_m, mask_rows, ylin_ref, scale_ref, shift_ref,
                     y_ref):
    i = pl.program_id(0)
    y = ylin_ref[...] * scale_ref[...] + shift_ref[...]
    if mask_rows:
        row = i * tile_m + jax.lax.broadcasted_iota(jnp.int32, y.shape, 0)
        y = jnp.where(row < n_rows, y, 0.0)
    y_ref[...] = y.astype(y_ref.dtype)


# ---------------------------------------------------------------------------
# Pass 2: Z = dropout(relu(A_norm @ Y)); accumulate directly in o_ref (f32).
# ---------------------------------------------------------------------------
def _smooth_relu_drop_kernel(n_rows, tile_k, mask_k, y_resident,
                             a_ref, y_ref, keep_ref, o_ref):
    k = pl.program_id(1)          # top level only -> interpret-safe
    num_k = pl.num_programs(1)

    @pl.when(k == 0)
    def _init():
        o_ref[...] = jnp.zeros_like(o_ref)

    a = a_ref[...]
    if mask_k:
        # Ragged last K block of un-padded A: zero the out-of-range columns
        # (Y's padded rows are already exact zeros, so the product is exact).
        col = k * tile_k + jax.lax.broadcasted_iota(jnp.int32, a.shape, 1)
        a = jnp.where(col < n_rows, a, jnp.zeros_like(a))

    if y_resident:
        y = y_ref[pl.ds(k * tile_k, tile_k), :]   # Y lives in VMEM, slice it
    else:
        y = y_ref[...]

    o_ref[...] += jnp.dot(a, y, preferred_element_type=jnp.float32)

    is_last = k == num_k - 1

    @pl.when(is_last)
    def _finalize():
        z = jnp.maximum(o_ref[...], 0.0)                    # ReLU
        o_ref[...] = z * keep_ref[...].astype(jnp.float32)  # scaled dropout


# ---------------------------------------------------------------------------
# Wrapper
# ---------------------------------------------------------------------------
def hypergcn_graphconv(x, a_norm, w, b, gamma, beta, drop_key,
                       drop_rate=DROP_RATE, training=True):
    n, c_in = x.shape
    c_out = w.shape[0]
    c_pad = _round_up(c_out, LANE)

    # A_norm should arrive in bf16; NO padded N x N copy is materialized here
    # (padding/raggedness is handled in-kernel).  Cast only if handed f32.
    if a_norm.dtype != jnp.bfloat16:
        a_norm = a_norm.astype(jnp.bfloat16)

    # Small one-time parameter plumbing (lane-pad Cout to 128, pads are zero
    # so padded columns stay exactly zero through BN).
    w_t = jnp.zeros((c_in, c_pad), jnp.bfloat16).at[:, :c_out].set(
        w.T.astype(jnp.bfloat16))
    b_p = jnp.zeros((1, c_pad), jnp.float32).at[:, :c_out].set(b.reshape(1, -1))
    g_p = jnp.zeros((1, c_pad), jnp.float32).at[:, :c_out].set(
        gamma.reshape(1, -1))
    be_p = jnp.zeros((1, c_pad), jnp.float32).at[:, :c_out].set(
        beta.reshape(1, -1))

    # ---- tile selection -----------------------------------------------------
    # K tile (lane dim of A): multiple of 128, or the full dim for small N.
    tk = n if n <= 512 else 512
    # Row tile: multiple of 8 (or the full dim); keep >= 2 row blocks once N
    # is big enough so both TensorCores get work on v7x ("parallel" axis).
    if n <= 256:
        tm = n
    else:
        tm = min(512, _round_up(pl.cdiv(n, 2), SUBLANE))
    n_pad_k = _round_up(n, tk)        # rows of the zero-padded Y
    tm1 = n if n <= 512 else 512      # pass-1 row tile

    # ---- pass 1a: Linear + column statistics --------------------------------
    num_m1 = pl.cdiv(n, tm1)
    ylin, csum, csq = pl.pallas_call(
        functools.partial(_linear_stats_kernel, n, tm1),
        grid=(num_m1,),
        in_specs=[
            pl.BlockSpec((tm1, c_in), lambda i: (i, 0)),    # X (row-tiled)
            pl.BlockSpec((c_in, c_pad), lambda i: (0, 0)),  # W^T (resident)
            pl.BlockSpec((1, c_pad), lambda i: (0, 0)),     # bias
        ],
        out_specs=[
            pl.BlockSpec((tm1, c_pad), lambda i: (i, 0)),   # Y_lin
            pl.BlockSpec((1, c_pad), lambda i: (0, 0)),     # col sum (acc)
            pl.BlockSpec((1, c_pad), lambda i: (0, 0)),     # col sumsq (acc)
        ],
        out_shape=[
            jax.ShapeDtypeStruct((n_pad_k, c_pad), jnp.float32),
            jax.ShapeDtypeStruct((1, c_pad), jnp.float32),
            jax.ShapeDtypeStruct((1, c_pad), jnp.float32),
        ],
        compiler_params=pltpu.CompilerParams(
            dimension_semantics=("arbitrary",)),
    )(x, w_t, b_p)

    # BN batch statistics -> per-column scale/shift (O(c_pad) plain XLA math).
    mean = csum / n
    var = jnp.maximum(csq / n - mean * mean, 0.0)   # biased batch variance
    inv = jax.lax.rsqrt(var + EPS)
    scale = g_p * inv
    shift = be_p - mean * scale
    # TODO(synk): running_mean/running_var buffer updates (train-mode side
    # effect of nn.BatchNorm1d) are not emitted; forward activations only.

    # ---- pass 1b: apply BN affine, cast to bf16, zero padded rows -----------
    tm2 = n_pad_k if n_pad_k <= 512 else 512
    num_m2 = pl.cdiv(n_pad_k, tm2)
    y = pl.pallas_call(
        functools.partial(_bn_apply_kernel, n, tm2, n != n_pad_k),
        grid=(num_m2,),
        in_specs=[
            pl.BlockSpec((tm2, c_pad), lambda i: (i, 0)),
            pl.BlockSpec((1, c_pad), lambda i: (0, 0)),
            pl.BlockSpec((1, c_pad), lambda i: (0, 0)),
        ],
        out_specs=pl.BlockSpec((tm2, c_pad), lambda i: (i, 0)),
        out_shape=jax.ShapeDtypeStruct((n_pad_k, c_pad), jnp.bfloat16),
        compiler_params=pltpu.CompilerParams(
            dimension_semantics=("parallel",)),
    )(ylin, scale, shift)

    # ---- dropout keep-mask (train mode, scaled 1/(1-p)) ----------------------
    # TODO(synk): RNG stream differs from torch.nn.Dropout; semantics match
    # (Bernoulli keep-prob 1-p, scale 1/(1-p)), applied fused in pass 2.
    if training and drop_rate > 0.0:
        keep_prob = 1.0 - drop_rate
        keep = jax.random.bernoulli(drop_key, keep_prob, (n, c_pad))
        keep_mask = keep.astype(jnp.bfloat16) * (1.0 / keep_prob)
    else:
        keep_mask = jnp.ones((n, c_pad), jnp.bfloat16)

    # ---- pass 2: Z = dropout(relu(A_norm @ Y)) -------------------------------
    num_m = pl.cdiv(n, tm)
    num_k = pl.cdiv(n, tk)          # num_k * tk == n_pad_k
    mask_k = (n % tk) != 0

    # Keep Y fully VMEM-resident (fetched once, no per-row-block re-fetch)
    # when its double-buffered footprint is comfortably under the scoped VMEM
    # default on all generations; otherwise stream one K tile at a time.
    y_resident = (2 * n_pad_k * c_pad * 2) <= 8 * 1024 * 1024
    if y_resident:
        y_spec = pl.BlockSpec((n_pad_k, c_pad), lambda i, k: (0, 0))
    else:
        y_spec = pl.BlockSpec((tk, c_pad), lambda i, k: (k, 0))

    out = pl.pallas_call(
        functools.partial(_smooth_relu_drop_kernel, n, tk, mask_k, y_resident),
        grid=(num_m, num_k),
        in_specs=[
            # A_norm (bf16, un-padded).  If an xprof trace shows exposed DMA
            # on this stream, add pipeline_mode=pl.Buffered(3) here.
            pl.BlockSpec((tm, tk), lambda i, k: (i, k)),
            y_spec,                                          # Y (bf16)
            pl.BlockSpec((tm, c_pad), lambda i, k: (i, 0)),  # keep mask
        ],
        out_specs=pl.BlockSpec((tm, c_pad), lambda i, k: (i, 0)),
        out_shape=jax.ShapeDtypeStruct((n, c_pad), jnp.float32),
        compiler_params=pltpu.CompilerParams(
            dimension_semantics=("parallel", "arbitrary")),
    )(a_norm, y, keep_mask)

    return out[:, :c_out]


if __name__ == "__main__":
    N, C_IN, C_OUT = 16, 32, 64

    key = jax.random.PRNGKey(0)
    kx, kw, kb, ka, kd = jax.random.split(key, 5)

    # Node features.
    x = jax.random.normal(kx, (N, C_IN), dtype=jnp.float32)

    # nn.Linear-style deterministic init.
    bound = 1.0 / (C_IN ** 0.5)
    w = jax.random.uniform(kw, (C_OUT, C_IN), jnp.float32, -bound, bound)
    b = jax.random.uniform(kb, (C_OUT,), jnp.float32, -bound, bound)
    gamma = jnp.ones((C_OUT,), jnp.float32)   # BN weight
    beta = jnp.zeros((C_OUT,), jnp.float32)   # BN bias

    # Synthetic graph G -> dense GCN-normalized adjacency A_norm [N, N],
    # handed to the kernel already in bf16 (no padded copy is made anywhere).
    adj = (jax.random.uniform(ka, (N, N)) < 0.3).astype(jnp.float32)
    adj = jnp.maximum(adj, adj.T)                       # symmetrize
    adj = adj + jnp.eye(N, dtype=jnp.float32)           # self loops
    deg = jnp.sum(adj, axis=1)
    d_inv_sqrt = 1.0 / jnp.sqrt(deg)
    a_norm = (adj * d_inv_sqrt[:, None] * d_inv_sqrt[None, :]).astype(
        jnp.bfloat16)

    out = hypergcn_graphconv(x, a_norm, w, b, gamma, beta, kd)
    out = jax.block_until_ready(out)
    assert out.shape == (N, C_OUT)
    assert bool(jnp.all(jnp.isfinite(out)))
    print("KERNEL_OK")
</pallas_src>

<mosaic_0001>
module attributes {stable_mosaic.version = 11 : i64} {
  func.func @_linear_stats_kernel(%arg0: i32, %arg1: memref<16x32xf32, #tpu.memory_space<vmem>>, %arg2: memref<32x128xbf16, #tpu.memory_space<vmem>>, %arg3: memref<1x128xf32, #tpu.memory_space<vmem>>, %arg4: memref<16x128xf32, #tpu.memory_space<vmem>>, %arg5: memref<1x128xf32, #tpu.memory_space<vmem>>, %arg6: memref<1x128xf32, #tpu.memory_space<vmem>>) attributes {dimension_semantics = [#tpu.dimension_semantics<arbitrary>], iteration_bounds = array<i64: 1>, scalar_prefetch = 0 : i64, scratch_operands = 0 : i64, tpu.core_type = #tpu.core_type<tc>, window_params = [{transform_indices = @transform_0, window_bounds = array<i64: 16, 32>}, {pipeline_mode = #tpu.pipeline_mode<synchronous>, transform_indices = @transform_1, window_bounds = array<i64: 32, 128>}, {pipeline_mode = #tpu.pipeline_mode<synchronous>, transform_indices = @transform_2, window_bounds = array<i64: 1, 128>}, {transform_indices = @transform_3, window_bounds = array<i64: 16, 128>}, {pipeline_mode = #tpu.pipeline_mode<synchronous>, transform_indices = @transform_4, window_bounds = array<i64: 1, 128>}, {pipeline_mode = #tpu.pipeline_mode<synchronous>, transform_indices = @transform_5, window_bounds = array<i64: 1, 128>}]} {
    %c0_i32 = arith.constant 0 : i32
    %0 = arith.cmpi eq, %arg0, %c0_i32 : i32
    %1 = arith.extui %0 : i1 to i32
    %c0_i32_0 = arith.constant 0 : i32
    %2 = arith.cmpi ne, %1, %c0_i32_0 : i32
    scf.if %2 {
      %cst_18 = arith.constant 0.000000e+00 : f32
      %22 = vector.broadcast %cst_18 : f32 to vector<1x128xf32>
      %c0_19 = arith.constant 0 : index
      %c0_20 = arith.constant 0 : index
      %23 = vector.load %arg5[%c0_19, %c0_20] : memref<1x128xf32, #tpu.memory_space<vmem>>, vector<1x128xf32>
      tpu.vector_store %arg5[%c0_19, %c0_20], %22 {strides = array<i32>} : memref<1x128xf32, #tpu.memory_space<vmem>>, vector<1x128xf32>,
      %cst_21 = arith.constant 0.000000e+00 : f32
      %24 = vector.broadcast %cst_21 : f32 to vector<1x128xf32>
      %c0_22 = arith.constant 0 : index
      %c0_23 = arith.constant 0 : index
      %25 = vector.load %arg6[%c0_22, %c0_23] : memref<1x128xf32, #tpu.memory_space<vmem>>, vector<1x128xf32>
      tpu.vector_store %arg6[%c0_22, %c0_23], %24 {strides = array<i32>} : memref<1x128xf32, #tpu.memory_space<vmem>>, vector<1x128xf32>,
    } else {
    }
    %c0 = arith.constant 0 : index
    %c0_1 = arith.constant 0 : index
    %3 = vector.load %arg1[%c0, %c0_1] : memref<16x32xf32, #tpu.memory_space<vmem>>, vector<16x32xf32>
    %4 = arith.truncf %3 : vector<16x32xf32> to vector<16x32xbf16>
    %c0_2 = arith.constant 0 : index
    %c0_3 = arith.constant 0 : index
    %5 = vector.load %arg2[%c0_2, %c0_3] : memref<32x128xbf16, #tpu.memory_space<vmem>>, vector<32x128xbf16>
    %cst = arith.constant dense<0.000000e+00> : vector<16x128xf32>
    %6 = tpu.matmul %4, %5, %cst {dimension_numbers = #tpu.dot_dimension_numbers<[1], [0], [0], [1], [0, 0, 1, 1], [], []>} : vector<16x32xbf16>, vector<32x128xbf16>, vector<16x128xf32> -> vector<16x128xf32>
    %c0_4 = arith.constant 0 : index
    %c0_5 = arith.constant 0 : index
    %7 = vector.load %arg3[%c0_4, %c0_5] : memref<1x128xf32, #tpu.memory_space<vmem>>, vector<1x128xf32>
    %8 = vector.broadcast %7 : vector<1x128xf32> to vector<16x128xf32>
    %9 = arith.addf %6, %8 : vector<16x128xf32>
    %c0_6 = arith.constant 0 : index
    %c0_7 = arith.constant 0 : index
    %10 = vector.load %arg4[%c0_6, %c0_7] : memref<16x128xf32, #tpu.memory_space<vmem>>, vector<16x128xf32>
    tpu.vector_store %arg4[%c0_6, %c0_7], %9 {strides = array<i32>} : memref<16x128xf32, #tpu.memory_space<vmem>>, vector<16x128xf32>,
    %c0_8 = arith.constant 0 : index
    %c0_9 = arith.constant 0 : index
    %11 = vector.load %arg5[%c0_8, %c0_9] : memref<1x128xf32, #tpu.memory_space<vmem>>, vector<1x128xf32>
    %cst_10 = arith.constant dense<0.000000e+00> : vector<128xf32>
    %12 = vector.multi_reduction <add>, %9, %cst_10 [0] : vector<16x128xf32> to vector<128xf32>
    %13 = vector.shape_cast %12 : vector<128xf32> to vector<1x128xf32>
    %14 = arith.addf %11, %13 : vector<1x128xf32>
    %c0_11 = arith.constant 0 : index
    %c0_12 = arith.constant 0 : index
    %15 = vector.load %arg5[%c0_11, %c0_12] : memref<1x128xf32, #tpu.memory_space<vmem>>, vector<1x128xf32>
    tpu.vector_store %arg5[%c0_11, %c0_12], %14 {strides = array<i32>} : memref<1x128xf32, #tpu.memory_space<vmem>>, vector<1x128xf32>,
    %c0_13 = arith.constant 0 : index
    %c0_14 = arith.constant 0 : index
    %16 = vector.load %arg6[%c0_13, %c0_14] : memref<1x128xf32, #tpu.memory_space<vmem>>, vector<1x128xf32>
    %17 = arith.mulf %9, %9 : vector<16x128xf32>
    %cst_15 = arith.constant dense<0.000000e+00> : vector<128xf32>
    %18 = vector.multi_reduction <add>, %17, %cst_15 [0] : vector<16x128xf32> to vector<128xf32>
    %19 = vector.shape_cast %18 : vector<128xf32> to vector<1x128xf32>
    %20 = arith.addf %16, %19 : vector<1x128xf32>
    %c0_16 = arith.constant 0 : index
    %c0_17 = arith.constant 0 : index
    %21 = vector.load %arg6[%c0_16, %c0_17] : memref<1x128xf32, #tpu.memory_space<vmem>>, vector<1x128xf32>
    tpu.vector_store %arg6[%c0_16, %c0_17], %20 {strides = array<i32>} : memref<1x128xf32, #tpu.memory_space<vmem>>, vector<1x128xf32>,
    return
  }
  func.func @transform_0(%arg0: i32) -> (i32, i32) {
    %c0_i32 = arith.constant 0 : i32
    %c0_i32_0 = arith.constant 0 : i32
    return %arg0, %c0_i32 : i32, i32
  }
  func.func @transform_1(%arg0: i32) -> (i32, i32) {
    %c0_i32 = arith.constant 0 : i32
    %c0_i32_0 = arith.constant 0 : i32
    %c0_i32_1 = arith.constant 0 : i32
    return %c0_i32, %c0_i32_0 : i32, i32
  }
  func.func @transform_2(%arg0: i32) -> (i32, i32) {
    %c0_i32 = arith.constant 0 : i32
    %c0_i32_0 = arith.constant 0 : i32
    %c0_i32_1 = arith.constant 0 : i32
    return %c0_i32, %c0_i32_0 : i32, i32
  }
  func.func @transform_3(%arg0: i32) -> (i32, i32) {
    %c0_i32 = arith.constant 0 : i32
    %c0_i32_0 = arith.constant 0 : i32
    return %arg0, %c0_i32 : i32, i32
  }
  func.func @transform_4(%arg0: i32) -> (i32, i32) {
    %c0_i32 = arith.constant 0 : i32
    %c0_i32_0 = arith.constant 0 : i32
    %c0_i32_1 = arith.constant 0 : i32
    return %c0_i32, %c0_i32_0 : i32, i32
  }
  func.func @transform_5(%arg0: i32) -> (i32, i32) {
    %c0_i32 = arith.constant 0 : i32
    %c0_i32_0 = arith.constant 0 : i32
    %c0_i32_1 = arith.constant 0 : i32
    return %c0_i32, %c0_i32_0 : i32, i32
  }
}

</mosaic_0001>

<bundles_post_ra>
// kernel: tpu_custom_call.1
= control target key start
LH: loop header
LB: loop body
LE: loop exit
PB: predicated region body
PF: predicated region fallthrough
CT: control target
= control target key end

     0   :  { %11 = vsyncpa [#allocation3], 0  ;;  %s395_s0 = inlined_call_operand.hbm [shape: f32[16,32], index: 0, kind: input, shape index: {}]   ;;  %s396_s1 = inlined_call_operand.hbm [shape: bf16[32,128], index: 1, kind: input, shape index: {}]   ;;  %s397_s2 = inlined_call_operand.vmem [shape: f32[1,128], index: 2, kind: input, shape index: {}]   ;;  %s398_s3 = inlined_call_operand.hbm [shape: f32[16,128], index: 3, kind: output, shape index: {0}]   ;;  %s399_s4 = inlined_call_operand.hbm [shape: f32[1,128], index: 4, kind: output, shape index: {1}]   ;;  %s400_s5 = inlined_call_operand.hbm [shape: f32[1,128], index: 5, kind: output, shape index: {2}]  }
   0x1   :  { %12 = vsyncpa [#allocation6], 0 }
   0x2   :  { %13 = vsyncpa [#allocation4], 0 }
   0x3   :  { %14 = vsyncpa [#allocation9], 0  ;;  %s330_s18 = smov [#allocation2]  }
   0x4   :  { %s20_s19 = sshll.u32 %s330_s18, 4  ;;  %s21_s19 = int_to_ptr.vmem [resolvable:$true] %s20_s19 }
   0x5   :  { %s230_s20 = scalar_lea.vmem %s21_s19, 256  ;;  %p235_p1 = scmp.lt.s32.totalorder %s21_s19, %s21_s19 }
   0x6   :  { %p231_p0 = scmp.ne.s32.totalorder %s21_s19, %s230_s20  ;;  %p236_p2 = scmp.lt.s32.totalorder %s230_s20, %s230_s20 }
   0x8   :  { %p237_p3 = por %p236_p2, %p235_p1 }
   0xa   :  { %p238_p4 = pnand %p237_p3, %p231_p0 }
   0xc   :  { %241 = shalt.err (!%p238_p4)
}
   0xd   :  { %s331_s21 = smov 128   ;;  %s332_s22 = smov 8  }
   0xe   :  { %26 = dma.hbm_to_vmem [thread:$0]  %s395_s0, 256, %s21_s19, [#allocation3], %s331_s21, %s331_s21, %s332_s22  }
   0xf   :  { %s333_s25 = smov [#allocation5]  }
  0x10   :  { %s32_s26 = sshll.u32 %s333_s25, 4  ;;  %s33_s26 = int_to_ptr.vmem [resolvable:$true] %s32_s26 }
  0x11   :  { %s250_s27 = scalar_lea.vmem %s33_s26, 256  ;;  %p255_p6 = scmp.lt.s32.totalorder %s33_s26, %s33_s26 }
  0x12   :  { %p251_p5 = scmp.ne.s32.totalorder %s33_s26, %s250_s27  ;;  %p256_p7 = scmp.lt.s32.totalorder %s250_s27, %s250_s27 }
  0x14   :  { %p257_p8 = por %p256_p7, %p255_p6 }
  0x16   :  { %p258_p9 = pnand %p257_p8, %p251_p5 }
  0x18   :  { %261 = shalt.err (!%p258_p9)
}
  0x19   :  { %s334_s28 = smov 64   ;;  %s335_s29 = smov 4  }
  0x1a   :  { %38 = dma.hbm_to_vmem [thread:$0]  %s396_s1, 256, %s33_s26, [#allocation6], %s334_s28, %s334_s28, %s335_s29  }
  0x1b   :  { %322 = dma.done.wait [#allocation3], 256  }
  0x1c   :  { %323 = vsyncadd [#allocation3], 4294967040 }
  0x1d   :  { %324 = dma.done.wait [#allocation6], 256  }
  0x1e   :  { %325 = vsyncadd [#allocation6], 4294967040  ;;  %v336_v0 = vmov 0.0   ;;  %vm337_vm0 = vmmov 0   ;;  %v220_v1 = vld [vmem:[#allocation5 + $0x8] sm:$0xff]   ;;  %v221_v2 = vld [vmem:[#allocation5] sm:$0xff]  }
  0x1f   :  { %201 = vmatprep.subr.bf16.mxu0 %v336_v0  ;;  %52 = vst [vmem:[#allocation8] sm:$0x1] %v336_v0  ;;  %53 = vst [vmem:[#allocation10] sm:$0x1] %v336_v0  ;;  %205 = vmatprep.mubr.msk.bf16.mxu0 %vm337_vm0, %v336_v0  ;;  %v54_v3 = vld [vmem:[#allocation2] sm:$0xff]  ;;  %v55_v4 = vld [vmem:[#allocation2 + $0x8] sm:$0xff] }
  0x20   :  { %202 = vmatpush3.bf16.msra.mxu0 %v220_v1  ;;  %v56_v5 = vpack.c.bf16 %v55_v4, %v54_v3  ;;  %vm80_vm1 = vcmask 261120   ;;  %v194_v6 = vld [vmem:[%s397_s2] ss:$0 sm:$0xff]  ;;  %s338_s7 = smov [#allocation7]  }
  0x21   :  { %203 = vmatprep.subr.bf16.mxu0 %v336_v0  ;;  %s154_s8 = sshll.u32 %s338_s7, 4  ;;  %s155_s8 = int_to_ptr.vmem [resolvable:$true] %s154_s8 }
  0x22   :  { %s262_s9 = scalar_lea.vmem %s155_s8, 256  ;;  %p267_p11 = scmp.lt.s32.totalorder %s155_s8, %s155_s8 }
  0x23   :  { %p263_p10 = scmp.ne.s32.totalorder %s155_s8, %s262_s9  ;;  %p268_p12 = scmp.lt.s32.totalorder %s262_s9, %s262_s9 }
  0x24   :  { %204 = vmatpush3.bf16.msra.mxu0 %v221_v2 }
  0x25   :  { %p269_p13 = por %p268_p12, %p267_p11 }
  0x27   :  { %206 = vmatmul.mubr.msk.bf16.vlgmr.msra.gmra.mxu0 %vm80_vm1, %v56_v5  ;;  %p270_p0 = pnand %p269_p13, %p263_p10 }
  0xe7   :  { %v118_v7 = vpop.f32.mrf.mxu0 }
  0xe8   :  { %v119_v8 = vadd.f32 %v194_v6, %v118_v7 }
  0xe9   :  { %v207_v9 = vpop.f32.mrf.mxu0 }
  0xea   :  { %125 = vst [vmem:[#allocation7] sm:$0xff] %v119_v8  ;;  %v138_v13 = vmul.f32 %v119_v8, %v119_v8 }
  0xeb   :  { %v121_v10 = vpop.f32.mrf.mxu0 }
  0xec   :  { %v122_v11 = vadd.f32 %v194_v6, %v121_v10 }
  0xed   :  { %v208_v12 = vpop.f32.mrf.mxu0 }
  0xee   :  { %v128_v14 = vadd.f32 %v122_v11, %v119_v8  ;;  %v139_v15 = vmul.f32 %v122_v11, %v122_v11  ;;  %126 = vst [vmem:[#allocation7 + $0x8] sm:$0xff] %v122_v11 }
  0xef   :  { %273 = shalt.err (!%p270_p0)
}
  0xf0   :  { %160 = dma.vmem_to_hbm [thread:$0]  %s155_s8, 256, %s398_s3, [#allocation4], %s331_s21, %s331_s21, %s332_s22   ;;  %v129_v16 = vrot.slane %v128_v14, 4  ;;  %v140_v17 = vadd.f32 %v139_v15, %v138_v13  ;;  %v127_v26 = vld [vmem:[#allocation8] sm:$0x1] }
  0xf1   :  { %s339_s11 = smov [#allocation8]   ;;  %v137_v29 = vld [vmem:[#allocation10] sm:$0x1]  ;;  %s340_s13 = smov [#allocation10]  }
  0xf2   :  { %v130_v18 = vadd.f32 %v129_v16, %v128_v14  ;;  %v141_v19 = vrot.slane %v140_v17, 4  ;;  %s167_s12 = sshll.u32 %s339_s11, 4  ;;  %s177_s14 = sshll.u32 %s340_s13, 4  ;;  %s168_s12 = int_to_ptr.vmem [resolvable:$true] %s167_s12  ;;  %s178_s14 = int_to_ptr.vmem [resolvable:$true] %s177_s14 }
  0xf3   :  { %s282_s3 = scalar_lea.vmem %s168_s12, 16  ;;  %s286_s15 = scalar_lea.vmem %s168_s12, 32 }
  0xf4   :  { %v131_v20 = vrot.slane %v130_v18, 2  ;;  %v142_v21 = vadd.f32 %v141_v19, %v140_v17  ;;  %p283_p1 = scmp.ne.s32.totalorder %s168_s12, %s282_s3  ;;  %p287_p2 = scmp.lt.s32.totalorder %s168_s12, %s168_s12 }
  0xf5   :  { %p288_p3 = scmp.lt.s32.totalorder %s286_s15, %s282_s3 }
  0xf6   :  { %v132_v22 = vadd.f32 %v131_v20, %v130_v18  ;;  %v143_v23 = vrot.slane %v142_v21, 2 }
  0xf7   :  { %p289_p4 = por %p288_p3, %p287_p2 }
  0xf8   :  { %v144_v24 = vadd.f32 %v143_v23, %v142_v21  ;;  %v133_v25 = vrot.slane %v132_v22, 1 }
  0xf9   :  { %p290_p5 = pnand %p289_p4, %p283_p1 }
  0xfa   :  { %v134_v27 = vadd.f32 %v133_v25, %v132_v22  ;;  %v145_v28 = vrot.slane %v144_v24, 1 }
  0xfc   :  { %v135_v30 = vadd.f32 %v134_v27, %v127_v26  ;;  %v146_v31 = vadd.f32 %v145_v28, %v144_v24 }
  0xfe   :  { %136 = vst [vmem:[#allocation8] sm:$0x1] %v135_v30  ;;  %v147_v32 = vadd.f32 %v146_v31, %v137_v29 }
  0xff   :  { %293 = shalt.err (!%p290_p5)
}
 0x100   :  { %170 = dma.vmem_to_hbm [thread:$0]  %s168_s12, 16, %s399_s4, [#allocation9]   ;;  %148 = vst [vmem:[#allocation10] sm:$0x1] %v147_v32 }
 0x101   :  { %s302_s18 = scalar_lea.vmem %s178_s14, 16  ;;  %s306_s19 = scalar_lea.vmem %s178_s14, 32 }
 0x102   :  { %p303_p6 = scmp.ne.s32.totalorder %s178_s14, %s302_s18  ;;  %p307_p7 = scmp.lt.s32.totalorder %s178_s14, %s178_s14 }
 0x103   :  { %p308_p8 = scmp.lt.s32.totalorder %s306_s19, %s302_s18 }
 0x105   :  { %p309_p9 = por %p308_p8, %p307_p7 }
 0x107   :  { %p310_p10 = pnand %p309_p9, %p303_p6 }
 0x109   :  { %313 = shalt.err (!%p310_p10)
}
 0x10a   :  { %180 = dma.vmem_to_hbm [thread:$0]  %s178_s14, 16, %s400_s5, [#allocation9]  }
 0x10b   :  { %326 = dma.done.wait [#allocation4], 256  }
 0x10c   :  { %327 = vsyncadd [#allocation4], 4294967040 }
 0x10d   :  { %328 = dma.done.wait [#allocation9], 32  }
 0x10e   :  { %329 = vsyncadd [#allocation9], 4294967264 }
 0x10f   :  { %190 = vsyncpa [#allocation3], 1 }
 0x110   :  { %191 = vsyncpa [#allocation6], 1 }
 0x111   :  { %192 = vsyncpa [#allocation4], 1 }
 0x112   :  { %193 = vsyncpa [#allocation9], 1 }

</bundles_post_ra>
